<compile_context>
chip_gen: v7x
topology: tpu7x:2x2x1
jax: 0.10.0
libtpu: 0.0.40
codegen_flags: <defaults>
</compile_context>

<pallas_src>
import functools

import jax
import jax.numpy as jnp
import numpy as np
from jax import lax
from jax.experimental import pallas as pl
from jax.experimental.pallas import tpu as pltpu


def _as_rnn_kernel(c_ref, wt_ref, u_ref, r_scr, *,
                   slabs_per_block, total_steps, full_size, needs_mask):
    """Runs `slabs_per_block * 8` recurrence steps of this time block.

    c_ref  : (slabs_per_block, 8, F)  c[t] = Lambda*b + (1-Lambda)*[X[t], 0]   (f32)
    wt_ref : (F, F)                   W.T * Lambda[None, :]                    (bf16)
    u_ref  : (1, F)                   output: final-step pre-activation U      (f32)
    r_scr  : (1, F)                   R carried across grid (time) blocks      (f32)
    """
    @pl.when(pl.program_id(0) == 0)
    def _():
        r_scr[...] = jnp.zeros_like(r_scr)

    wt = wt_ref[...]                      # (F, F) bf16, loaded once per block
    base = pl.program_id(0) * slabs_per_block * 8

    def slab_body(s, carry):
        r, u = carry
        c_slab = c_ref[s]                 # (8, F): one dense tile load per 8 steps
        for rr in range(8):               # static 8-step unroll (capped code size)
            wr = jnp.dot(r.astype(jnp.bfloat16), wt,
                         preferred_element_type=jnp.float32)   # MXU (1,F)x(F,F)
            u_new = wr + c_slab[rr:rr + 1, :]                  # VPU add (f32)
            r_new = jnp.tanh(u_new)                            # EUP (f32); phi = tanh
            if needs_mask:                                     # only emitted if T padded
                valid = base + s * 8 + rr < total_steps
                u_new = jnp.where(valid, u_new, u)
                r_new = jnp.where(valid, r_new, r)
            r, u = r_new, u_new
        return r, u

    u0 = jnp.zeros((1, full_size), jnp.float32)
    r_f, u_f = lax.fori_loop(0, slabs_per_block, slab_body, (r_scr[...], u0))

    r_scr[...] = r_f          # carry R to the next time block
    u_ref[...] = u_f          # out block is revisited (constant index map); last write wins


def as_rnn_forward(X, W, b, Lambda, visible_size, *,
                   max_steps_per_block=512, interpret=False):
    """JAX/Pallas equivalent of AS_RNN.forward (non-linearity = 'tanh')."""
    T, V = X.shape
    F = int(Lambda.shape[0])
    H = F - V

    X = X.astype(jnp.float32)
    W = W.astype(jnp.float32)
    b = jnp.zeros((F,), jnp.float32) if b is None else b.astype(jnp.float32)
    Lambda = Lambda.astype(jnp.float32)

    # Fold Lambda into the recurrent weights: Lambda[j]*(R @ W.T)[j] == (R @ (W.T * Lambda))[j].
    # bf16 operands feed the MXU; accumulation stays f32 via preferred_element_type.
    wt_lam = (W.T * Lambda[None, :]).astype(jnp.bfloat16)            # (F, F)

    # Hoist all time-local (non-recurrent) work off the serial chain:
    #   c[t] = Lambda * b + (1 - Lambda) * [X[t], 0_hidden]
    y_pad = jnp.pad(X, ((0, 0), (0, H)))                             # (T, F)
    c = (Lambda * b)[None, :] + (1.0 - Lambda)[None, :] * y_pad      # (T, F), f32

    # Pack time into dense (8, F) slabs (identical VMEM bytes to a (T, F) array tiled
    # (8,128): 512 B/step, zero sublane padding), block the time axis for large T.
    slabs_per_block = max(1, min(pl.cdiv(T, 8), max_steps_per_block // 8))
    n_blocks = pl.cdiv(T, slabs_per_block * 8)
    padded_T = n_blocks * slabs_per_block * 8
    needs_mask = padded_T != T
    if needs_mask:
        c = jnp.pad(c, ((0, padded_T - T), (0, 0)))
    c = c.reshape(n_blocks * slabs_per_block, 8, F)

    kernel = functools.partial(
        _as_rnn_kernel,
        slabs_per_block=slabs_per_block,
        total_steps=T,
        full_size=F,
        needs_mask=needs_mask,
    )

    u_final = pl.pallas_call(
        kernel,
        out_shape=jax.ShapeDtypeStruct((1, F), jnp.float32),
        grid_spec=pltpu.PrefetchScalarGridSpec(
            num_scalar_prefetch=0,
            grid=(n_blocks,),
            in_specs=[
                pl.BlockSpec((slabs_per_block, 8, F), lambda i: (i, 0, 0)),  # c time block
                pl.BlockSpec((F, F), lambda i: (0, 0)),                      # weights, resident
            ],
            out_specs=pl.BlockSpec((1, F), lambda i: (0, 0)),                # resident accumulator
            scratch_shapes=[pltpu.VMEM((1, F), jnp.float32)],                # carried R
        ),
        compiler_params=pltpu.CompilerParams(
            dimension_semantics=("arbitrary",),           # recurrent time axis: in order
            vmem_limit_bytes=32 * 1024 * 1024,            # explicit (v5e default scoped = 16 MiB)
        ),
        interpret=interpret,
    )(c, wt_lam)

    return u_final[0, :V]


def as_rnn_reference(X, W, b, Lambda, visible_size):
    """Pure-JAX transcription of the PyTorch AS_RNN.forward (for verification)."""
    T, V = X.shape
    F = int(Lambda.shape[0])
    R = jnp.zeros((F,), jnp.float32)
    U = jnp.zeros((F,), jnp.float32)
    for t in range(T):
        Y = jnp.zeros((F,), jnp.float32).at[:V].set(X[t])
        WR = W @ R + b
        U = Lambda * WR + (1.0 - Lambda) * Y
        R = jnp.tanh(U)
    return U[:V]


if __name__ == "__main__":
    # Module config: channel_size=32, reverse_nodes=False, hidden_size=96,
    # bias=True, non-linearity='tanh', lambda=0.5  ->  full_size F = 128 (lane-aligned)
    visible_size = 32
    hidden_size = 96
    F = visible_size + hidden_size
    recurrence = 0.5
    T = 16

    key = jax.random.PRNGKey(0)
    kx, kw, kb = jax.random.split(key, 3)

    # nn.Linear(full_size, full_size, bias=True)-style init
    bound = 1.0 / np.sqrt(F)
    W = jax.random.uniform(kw, (F, F), jnp.float32, -bound, bound)
    b = jax.random.uniform(kb, (F,), jnp.float32, -bound, bound)

    # Input X: (T, visible_size)
    X = jax.random.normal(kx, (T, visible_size), jnp.float32)

    # Lambda: recurrence on the visible nodes, 1 on the hidden nodes
    Lambda = jnp.ones((F,), jnp.float32).at[:visible_size].set(recurrence)

    out = as_rnn_forward(X, W, b, Lambda, visible_size)
    out = jax.block_until_ready(out)

    ref = as_rnn_reference(X, W, b, Lambda, visible_size)
    # bf16 matmul operands (f32 accumulation / elementwise) -> loosened tolerance.
    np.testing.assert_allclose(np.asarray(out), np.asarray(ref), rtol=2e-2, atol=2e-2)

    print("KERNEL_OK")
</pallas_src>

<mosaic_0001>
module attributes {stable_mosaic.version = 11 : i64} {
  func.func @_as_rnn_kernel(%arg0: i32, %arg1: memref<2x8x128xf32, #tpu.memory_space<vmem>>, %arg2: memref<128x128xbf16, #tpu.memory_space<vmem>>, %arg3: memref<1x128xf32, #tpu.memory_space<vmem>>, %arg4: memref<1x128xf32, #tpu.memory_space<vmem>>) attributes {dimension_semantics = [#tpu.dimension_semantics<arbitrary>], iteration_bounds = array<i64: 1>, scalar_prefetch = 0 : i64, scratch_operands = 1 : i64, tpu.core_type = #tpu.core_type<tc>, window_params = [{transform_indices = @transform_0, window_bounds = array<i64: 2, 8, 128>}, {pipeline_mode = #tpu.pipeline_mode<synchronous>, transform_indices = @transform_1, window_bounds = array<i64: 128, 128>}, {pipeline_mode = #tpu.pipeline_mode<synchronous>, transform_indices = @transform_2, window_bounds = array<i64: 1, 128>}]} {
    %c0_i32 = arith.constant 0 : i32
    %0 = arith.cmpi eq, %arg0, %c0_i32 : i32
    %1 = arith.extui %0 : i1 to i32
    %c0_i32_0 = arith.constant 0 : i32
    %2 = arith.cmpi ne, %1, %c0_i32_0 : i32
    scf.if %2 {
      %cst_10 = arith.constant 0.000000e+00 : f32
      %10 = vector.broadcast %cst_10 : f32 to vector<1x128xf32>
      %c0_11 = arith.constant 0 : index
      %c0_12 = arith.constant 0 : index
      %11 = vector.load %arg4[%c0_11, %c0_12] : memref<1x128xf32, #tpu.memory_space<vmem>>, vector<1x128xf32>
      tpu.vector_store %arg4[%c0_11, %c0_12], %10 {strides = array<i32>} : memref<1x128xf32, #tpu.memory_space<vmem>>, vector<1x128xf32>,
    } else {
    }
    %c0 = arith.constant 0 : index
    %c0_1 = arith.constant 0 : index
    %3 = vector.load %arg2[%c0, %c0_1] : memref<128x128xbf16, #tpu.memory_space<vmem>>, vector<128x128xbf16>
    %cst = arith.constant 0.000000e+00 : f32
    %4 = vector.broadcast %cst : f32 to vector<1x128xf32>
    %c0_2 = arith.constant 0 : index
    %c0_3 = arith.constant 0 : index
    %5 = vector.load %arg4[%c0_2, %c0_3] : memref<1x128xf32, #tpu.memory_space<vmem>>, vector<1x128xf32>
    %c0_i32_4 = arith.constant 0 : i32
    %c2_i32 = arith.constant 2 : i32
    %6 = arith.addi %c0_i32_4, %c2_i32 : i32
    %c1_i32 = arith.constant 1 : i32
    %7:2 = scf.for %arg5 = %c0_i32_4 to %6 step %c1_i32 iter_args(%arg6 = %5, %arg7 = %4) -> (vector<1x128xf32>, vector<1x128xf32>)  : i32 {
      %10 = arith.index_cast %arg5 : i32 to index
      %c0_10 = arith.constant 0 : index
      %c0_11 = arith.constant 0 : index
      %11 = vector.load %arg1[%10, %c0_10, %c0_11] : memref<2x8x128xf32, #tpu.memory_space<vmem>>, vector<1x8x128xf32>
      %12 = vector.shape_cast %11 : vector<1x8x128xf32> to vector<8x128xf32>
      %13 = arith.truncf %arg6 : vector<1x128xf32> to vector<1x128xbf16>
      %cst_12 = arith.constant dense<0.000000e+00> : vector<1x128xf32>
      %14 = tpu.matmul %13, %3, %cst_12 {dimension_numbers = #tpu.dot_dimension_numbers<[1], [0], [0], [1], [0, 0, 1, 1], [], []>} : vector<1x128xbf16>, vector<128x128xbf16>, vector<1x128xf32> -> vector<1x128xf32>
      %15 = vector.extract_strided_slice %12 {offsets = [0, 0], sizes = [1, 128], strides = [1, 1]} : vector<8x128xf32> to vector<1x128xf32>
      %16 = arith.addf %14, %15 : vector<1x128xf32>
      %17 = math.tanh %16 : vector<1x128xf32>
      %18 = arith.truncf %17 : vector<1x128xf32> to vector<1x128xbf16>
      %cst_13 = arith.constant dense<0.000000e+00> : vector<1x128xf32>
      %19 = tpu.matmul %18, %3, %cst_13 {dimension_numbers = #tpu.dot_dimension_numbers<[1], [0], [0], [1], [0, 0, 1, 1], [], []>} : vector<1x128xbf16>, vector<128x128xbf16>, vector<1x128xf32> -> vector<1x128xf32>
      %20 = vector.extract_strided_slice %12 {offsets = [1, 0], sizes = [1, 128], strides = [1, 1]} : vector<8x128xf32> to vector<1x128xf32>
      %21 = arith.addf %19, %20 : vector<1x128xf32>
      %22 = math.tanh %21 : vector<1x128xf32>
      %23 = arith.truncf %22 : vector<1x128xf32> to vector<1x128xbf16>
      %cst_14 = arith.constant dense<0.000000e+00> : vector<1x128xf32>
      %24 = tpu.matmul %23, %3, %cst_14 {dimension_numbers = #tpu.dot_dimension_numbers<[1], [0], [0], [1], [0, 0, 1, 1], [], []>} : vector<1x128xbf16>, vector<128x128xbf16>, vector<1x128xf32> -> vector<1x128xf32>
      %25 = vector.extract_strided_slice %12 {offsets = [2, 0], sizes = [1, 128], strides = [1, 1]} : vector<8x128xf32> to vector<1x128xf32>
      %26 = arith.addf %24, %25 : vector<1x128xf32>
      %27 = math.tanh %26 : vector<1x128xf32>
      %28 = arith.truncf %27 : vector<1x128xf32> to vector<1x128xbf16>
      %cst_15 = arith.constant dense<0.000000e+00> : vector<1x128xf32>
      %29 = tpu.matmul %28, %3, %cst_15 {dimension_numbers = #tpu.dot_dimension_numbers<[1], [0], [0], [1], [0, 0, 1, 1], [], []>} : vector<1x128xbf16>, vector<128x128xbf16>, vector<1x128xf32> -> vector<1x128xf32>
      %30 = vector.extract_strided_slice %12 {offsets = [3, 0], sizes = [1, 128], strides = [1, 1]} : vector<8x128xf32> to vector<1x128xf32>
      %31 = arith.addf %29, %30 : vector<1x128xf32>
      %32 = math.tanh %31 : vector<1x128xf32>
      %33 = arith.truncf %32 : vector<1x128xf32> to vector<1x128xbf16>
      %cst_16 = arith.constant dense<0.000000e+00> : vector<1x128xf32>
      %34 = tpu.matmul %33, %3, %cst_16 {dimension_numbers = #tpu.dot_dimension_numbers<[1], [0], [0], [1], [0, 0, 1, 1], [], []>} : vector<1x128xbf16>, vector<128x128xbf16>, vector<1x128xf32> -> vector<1x128xf32>
      %35 = vector.extract_strided_slice %12 {offsets = [4, 0], sizes = [1, 128], strides = [1, 1]} : vector<8x128xf32> to vector<1x128xf32>
      %36 = arith.addf %34, %35 : vector<1x128xf32>
      %37 = math.tanh %36 : vector<1x128xf32>
      %38 = arith.truncf %37 : vector<1x128xf32> to vector<1x128xbf16>
      %cst_17 = arith.constant dense<0.000000e+00> : vector<1x128xf32>
      %39 = tpu.matmul %38, %3, %cst_17 {dimension_numbers = #tpu.dot_dimension_numbers<[1], [0], [0], [1], [0, 0, 1, 1], [], []>} : vector<1x128xbf16>, vector<128x128xbf16>, vector<1x128xf32> -> vector<1x128xf32>
      %40 = vector.extract_strided_slice %12 {offsets = [5, 0], sizes = [1, 128], strides = [1, 1]} : vector<8x128xf32> to vector<1x128xf32>
      %41 = arith.addf %39, %40 : vector<1x128xf32>
      %42 = math.tanh %41 : vector<1x128xf32>
      %43 = arith.truncf %42 : vector<1x128xf32> to vector<1x128xbf16>
      %cst_18 = arith.constant dense<0.000000e+00> : vector<1x128xf32>
      %44 = tpu.matmul %43, %3, %cst_18 {dimension_numbers = #tpu.dot_dimension_numbers<[1], [0], [0], [1], [0, 0, 1, 1], [], []>} : vector<1x128xbf16>, vector<128x128xbf16>, vector<1x128xf32> -> vector<1x128xf32>
      %45 = vector.extract_strided_slice %12 {offsets = [6, 0], sizes = [1, 128], strides = [1, 1]} : vector<8x128xf32> to vector<1x128xf32>
      %46 = arith.addf %44, %45 : vector<1x128xf32>
      %47 = math.tanh %46 : vector<1x128xf32>
      %48 = arith.truncf %47 : vector<1x128xf32> to vector<1x128xbf16>
      %cst_19 = arith.constant dense<0.000000e+00> : vector<1x128xf32>
      %49 = tpu.matmul %48, %3, %cst_19 {dimension_numbers = #tpu.dot_dimension_numbers<[1], [0], [0], [1], [0, 0, 1, 1], [], []>} : vector<1x128xbf16>, vector<128x128xbf16>, vector<1x128xf32> -> vector<1x128xf32>
      %50 = vector.extract_strided_slice %12 {offsets = [7, 0], sizes = [1, 128], strides = [1, 1]} : vector<8x128xf32> to vector<1x128xf32>
      %51 = arith.addf %49, %50 : vector<1x128xf32>
      %52 = math.tanh %51 : vector<1x128xf32>
      scf.yield %52, %51 : vector<1x128xf32>, vector<1x128xf32>
    }
    %c2_i32_5 = arith.constant 2 : i32
    %c0_6 = arith.constant 0 : index
    %c0_7 = arith.constant 0 : index
    %8 = vector.load %arg4[%c0_6, %c0_7] : memref<1x128xf32, #tpu.memory_space<vmem>>, vector<1x128xf32>
    tpu.vector_store %arg4[%c0_6, %c0_7], %7#0 {strides = array<i32>} : memref<1x128xf32, #tpu.memory_space<vmem>>, vector<1x128xf32>,
    %c0_8 = arith.constant 0 : index
    %c0_9 = arith.constant 0 : index
    %9 = vector.load %arg3[%c0_8, %c0_9] : memref<1x128xf32, #tpu.memory_space<vmem>>, vector<1x128xf32>
    tpu.vector_store %arg3[%c0_8, %c0_9], %7#1 {strides = array<i32>} : memref<1x128xf32, #tpu.memory_space<vmem>>, vector<1x128xf32>,
    return
  }
  func.func @transform_0(%arg0: i32) -> (i32, i32, i32) {
    %c0_i32 = arith.constant 0 : i32
    %c0_i32_0 = arith.constant 0 : i32
    %c0_i32_1 = arith.constant 0 : i32
    return %arg0, %c0_i32, %c0_i32_0 : i32, i32, i32
  }
  func.func @transform_1(%arg0: i32) -> (i32, i32) {
    %c0_i32 = arith.constant 0 : i32
    %c0_i32_0 = arith.constant 0 : i32
    %c0_i32_1 = arith.constant 0 : i32
    return %c0_i32, %c0_i32_0 : i32, i32
  }
  func.func @transform_2(%arg0: i32) -> (i32, i32) {
    %c0_i32 = arith.constant 0 : i32
    %c0_i32_0 = arith.constant 0 : i32
    %c0_i32_1 = arith.constant 0 : i32
    return %c0_i32, %c0_i32_0 : i32, i32
  }
}

</mosaic_0001>

<bundles_post_ra>
// kernel: tpu_custom_call.1
= control target key start
LH: loop header
LB: loop body
LE: loop exit
PB: predicated region body
PF: predicated region fallthrough
CT: control target
= control target key end

     0   :  { %7 = vsyncpa [#allocation4], 0  ;;  %s1168_s0 = inlined_call_operand.hbm [shape: f32[2,8,128], index: 0, kind: input, shape index: {}]   ;;  %s1169_s1 = inlined_call_operand.hbm [shape: bf16[128,128], index: 1, kind: input, shape index: {}]   ;;  %s1170_s2 = inlined_call_operand.hbm [shape: f32[1,128], index: 2, kind: output, shape index: {}]  }
   0x1   :  { %8 = vsyncpa [#allocation7], 0 }
   0x2   :  { %9 = vsyncpa [#allocation5], 0  ;;  %s875_s9 = smov [#allocation3]   ;;  %s787_s13 = scalar_lea.hbm %s1168_s0, 256 }
   0x3   :  { %s15_s10 = sshll.u32 %s875_s9, 4  ;;  %p788_p0 = scmp.ne.s32.totalorder %s1168_s0, %s787_s13  ;;  %s16_s10 = int_to_ptr.vmem [resolvable:$true] %s15_s10 }
   0x4   :  { %p791_p1 = scmp.lt.u32.totalorder %s787_s13, %s1168_s0 }
   0x6   :  { %p793_p2 = pnand %p791_p1, %p788_p0 }
   0x8   :  { %796 = shalt.err (!%p793_p2)
}
   0x9   :  { %s797_s18 = scalar_lea.vmem %s16_s10, 256  ;;  %p802_p4 = scmp.lt.s32.totalorder %s16_s10, %s16_s10 }
   0xa   :  { %p798_p3 = scmp.ne.s32.totalorder %s16_s10, %s797_s18  ;;  %p803_p5 = scmp.lt.s32.totalorder %s797_s18, %s797_s18 }
   0xc   :  { %p804_p6 = por %p803_p5, %p802_p4 }
   0xe   :  { %p805_p7 = pnand %p804_p6, %p798_p3 }
  0x10   :  { %808 = shalt.err (!%p805_p7)
}
  0x11   :  { %s876_s19 = smov 128   ;;  %s877_s20 = smov 8  }
  0x12   :  { %21 = dma.hbm_to_vmem [thread:$0]  %s1168_s0, 256, %s16_s10, [#allocation4], %s876_s19, %s876_s19, %s877_s20  }
  0x13   :  { %s878_s23 = smov [#allocation6]   ;;  %s809_s27 = scalar_lea.hbm %s1169_s1, 1024 }
  0x14   :  { %s27_s24 = sshll.u32 %s878_s23, 4  ;;  %p810_p8 = scmp.ne.s32.totalorder %s1169_s1, %s809_s27  ;;  %s28_s24 = int_to_ptr.vmem [resolvable:$true] %s27_s24 }
  0x15   :  { %p813_p9 = scmp.lt.u32.totalorder %s809_s27, %s1169_s1 }
  0x17   :  { %p815_p10 = pnand %p813_p9, %p810_p8 }
  0x19   :  { %818 = shalt.err (!%p815_p10)
}
  0x1a   :  { %s819_s4 = scalar_lea.vmem %s28_s24, 1024  ;;  %p824_p12 = scmp.lt.s32.totalorder %s28_s24, %s28_s24 }
  0x1b   :  { %p820_p11 = scmp.ne.s32.totalorder %s28_s24, %s819_s4  ;;  %p825_p13 = scmp.lt.s32.totalorder %s819_s4, %s819_s4 }
  0x1d   :  { %p826_p0 = por %p825_p13, %p824_p12 }
  0x1f   :  { %p827_p1 = pnand %p826_p0, %p820_p11 }
  0x21   :  { %830 = shalt.err (!%p827_p1)
}
  0x22   :  { %s879_s0 = smov 64   ;;  %s880_s5 = smov 4  }
  0x23   :  { %33 = dma.hbm_to_vmem [thread:$0]  %s1169_s1, 1024, %s28_s24, [#allocation7], %s879_s0, %s879_s0, %s880_s5  }
  0x24   :  { %861 = dma.done.wait [#allocation4], 256  }
  0x25   :  { %862 = vsyncadd [#allocation4], 4294967040 }
  0x26   :  { %863 = dma.done.wait [#allocation7], 1024  }
  0x27   :  { %864 = vsyncadd [#allocation7], 4294966272  ;;  %v881_v0 = vmov 0.0   ;;  %v924_v1 = vld [vmem:[#allocation6] sm:$0xf]  ;;  %s958_s1 = smov 0  }
  0x28   :  { %45 = vst [vmem:[#allocation2] sm:$0x1] %v881_v0  ;;  %v926_v2 = vld [vmem:[#allocation6 + $0x4] sm:$0xf]  ;;  %v928_v3 = vld [vmem:[#allocation6 + $0x8] sm:$0xf] }
  0x29   :  { %v930_v4 = vld [vmem:[#allocation6 + $0xc] sm:$0xf]  ;;  %v932_v5 = vld [vmem:[#allocation6 + $0x10] sm:$0xf]  ;;  %v934_v6 = vld [vmem:[#allocation6 + $0x14] sm:$0xf] }
  0x2a   :  { %v936_v7 = vld [vmem:[#allocation6 + $0x18] sm:$0xf]  ;;  %v938_v8 = vld [vmem:[#allocation6 + $0x1c] sm:$0xf]  ;;  %v940_v9 = vld [vmem:[#allocation6 + $0x20] sm:$0xf] }
  0x2b   :  { %v942_v10 = vld [vmem:[#allocation6 + $0x24] sm:$0xf]  ;;  %v944_v11 = vld [vmem:[#allocation6 + $0x28] sm:$0xf]  ;;  %v946_v12 = vld [vmem:[#allocation6 + $0x2c] sm:$0xf] }
  0x2c   :  { %v948_v13 = vld [vmem:[#allocation6 + $0x30] sm:$0xf]  ;;  %v950_v14 = vld [vmem:[#allocation6 + $0x34] sm:$0xf]  ;;  %v952_v15 = vld [vmem:[#allocation6 + $0x38] sm:$0xf] }
  0x2d   :  { %v954_v16 = vld [vmem:[#allocation6 + $0x3c] sm:$0xf] }
  0x2f   :  { %v62_v17 = vld [vmem:[#allocation2] sm:$0x1]  }
  0x30 LB: > { %v966_v18 = vcombine.low %v924_v1, %v926_v2  ;;  %v882_v19 = vmov 0.0   ;;  %v972_v20 = vcombine.low %v928_v3, %v930_v4  ;;  %vm883_vm0 = vmmov 0   ;;  %s504_s8 = sshll.u32 %s873_s1, 3  ;;  %s68_s1 = sadd.s32 1, %s873_s1   ;;  %s873_s1 = sphi %s958_s1, %s68_s1   ;;  %v869_v17 = vphi %v62_v17, %v1171_v17  }
  0x31   : > { %585 = vmatprep.subr.bf16.mxu0 %v882_v19  ;;  %605 = vmatprep.subr.bf16.mxu1 %v882_v19  ;;  %v985_v21 = vcombine.low %v932_v5, %v934_v6  ;;  %v993_v22 = vcombine.low %v936_v7, %v938_v8  ;;  %v1001_v23 = vcombine.low %v940_v9, %v942_v10  ;;  %s72_s9 = scalar_lea.vmem [#allocation3], %s504_s8  ;;  %p65_p2 = scmp.ge.s32.totalorder %s68_s1, 2  }
  0x32   : > { %586 = vmatpush3.bf16.msra.mxu0 %v966_v18  ;;  %601 = vmatprep.mubr.msk.bf16.mxu0 %vm883_vm0, %v882_v19  ;;  %v1009_v24 = vcombine.low %v944_v11, %v946_v12  ;;  %v1017_v25 = vcombine.low %v948_v13, %v950_v14  ;;  %v1025_v26 = vcombine.low %v952_v15, %v954_v16  ;;  %v1053_v28 = vld [vmem:[%s72_s9] sm:$0xff]  ;;  %s884_s10 = smov (%p65_p2), [#allocation8]  }
  0x33   : > { %587 = vmatprep.subr.bf16.mxu0 %v882_v19  ;;  %606 = vmatpush3.bf16.msra.mxu1 %v966_v18  ;;  %v74_v27 = vpack.c.bf16 %v869_v17, %v869_v17  ;;  %v166_v36 = vrot.slane %v1053_v28, 1  ;;  %v210_v44 = vrot.slane %v1053_v28, 2  ;;  %v254_v52 = vrot.slane %v1053_v28, 3  ;;  %s481_s11 = sshll.u32 (%p65_p2), %s884_s10, 4  ;;  %s482_s11 = int_to_ptr.vmem [resolvable:$true] %s481_s11 }
  0x34   : > { %621 = vmatprep.mubr.msk.bf16.mxu1 %vm883_vm0, %v882_v19  ;;  %607 = vmatprep.subr.bf16.mxu1 %v882_v19  ;;  %v298_v60 = vrot.slane %v1053_v28, 4  ;;  %s831_s12 = scalar_lea.vmem (%p65_p2), %s482_s11, 16  ;;  %s835_s13 = scalar_lea.vmem (%p65_p2), %s482_s11, 32 }
  0x35   :  { %p832_p3 = scmp.ne.s32.totalorder (%p65_p2), %s482_s11, %s831_s12  ;;  %p836_p4 = scmp.lt.s32.totalorder (%p65_p2), %s482_s11, %s482_s11 }
  0x36   : > { %588 = vmatpush3.bf16.msra.mxu0 %v972_v20  ;;  %p837_p5 = scmp.lt.s32.totalorder (%p65_p2), %s835_s13, %s831_s12 }
  0x37   : > { %589 = vmatprep.subr.bf16.mxu0 %v882_v19  ;;  %608 = vmatpush3.bf16.msra.mxu1 %v972_v20 }
  0x38   : > { %609 = vmatprep.subr.bf16.mxu1 %v882_v19  ;;  %p838_p6 = por (%p65_p2), %p837_p5, %p836_p4 }
  0x3a   : > { %590 = vmatpush3.bf16.msra.mxu0 %v985_v21  ;;  %p839_p7 = pnand (%p65_p2), %p838_p6, %p832_p3 }
  0x3b   : > { %591 = vmatprep.subr.bf16.mxu0 %v882_v19  ;;  %610 = vmatpush3.bf16.msra.mxu1 %v985_v21 }
  0x3c   : > { %611 = vmatprep.subr.bf16.mxu1 %v882_v19 }
  0x3e   : > { %592 = vmatpush3.bf16.msra.mxu0 %v993_v22 }
  0x3f   : > { %593 = vmatprep.subr.bf16.mxu0 %v882_v19  ;;  %612 = vmatpush3.bf16.msra.mxu1 %v993_v22 }
  0x40   : > { %613 = vmatprep.subr.bf16.mxu1 %v882_v19 }
  0x42   : > { %594 = vmatpush3.bf16.msra.mxu0 %v1001_v23 }
  0x43   : > { %595 = vmatprep.subr.bf16.mxu0 %v882_v19  ;;  %614 = vmatpush3.bf16.msra.mxu1 %v1001_v23 }
  0x44   : > { %615 = vmatprep.subr.bf16.mxu1 %v882_v19 }
  0x46   : > { %596 = vmatpush3.bf16.msra.mxu0 %v1009_v24 }
  0x47   : > { %597 = vmatprep.subr.bf16.mxu0 %v882_v19  ;;  %616 = vmatpush3.bf16.msra.mxu1 %v1009_v24 }
  0x48   : > { %617 = vmatprep.subr.bf16.mxu1 %v882_v19 }
  0x4a   : > { %598 = vmatpush3.bf16.msra.mxu0 %v1017_v25 }
  0x4b   : > { %599 = vmatprep.subr.bf16.mxu0 %v882_v19  ;;  %618 = vmatpush3.bf16.msra.mxu1 %v1017_v25 }
  0x4c   : > { %619 = vmatprep.subr.bf16.mxu1 %v882_v19 }
  0x4e   : > { %600 = vmatpush3.bf16.msra.mxu0 %v1025_v26 }
  0x4f   : > { %625 = vmatprep.subr.bf16.mxu0 %v882_v19  ;;  %620 = vmatpush3.bf16.msra.mxu1 %v1025_v26 }
  0x50   : > { %645 = vmatprep.subr.bf16.mxu1 %v882_v19 }
  0x51   : > { %602 = vmatmul.mubr.bf16.vlgmr.msra.gmra.mrb[0].mxu0 %v74_v27 }
  0x52   : > { %626 = vmatpush3.bf16.msra.mxu0 %v966_v18  ;;  %641 = vmatprep.mubr.msk.bf16.mxu0 %vm883_vm0, %v882_v19 }
  0x53   : > { %627 = vmatprep.subr.bf16.mxu0 %v882_v19 }
  0x56   : > { %628 = vmatpush3.bf16.msra.mxu0 %v972_v20 }
  0x57   : > { %629 = vmatprep.subr.bf16.mxu0 %v882_v19 }
  0x5a   : > { %630 = vmatpush3.bf16.msra.mxu0 %v985_v21 }
  0x5b   : > { %631 = vmatprep.subr.bf16.mxu0 %v882_v19 }
  0x5e   : > { %632 = vmatpush3.bf16.msra.mxu0 %v993_v22 }
  0x5f   : > { %633 = vmatprep.subr.bf16.mxu0 %v882_v19 }
  0x62   : > { %634 = vmatpush3.bf16.msra.mxu0 %v1001_v23 }
  0x63   : > { %635 = vmatprep.subr.bf16.mxu0 %v882_v19 }
  0x66   : > { %636 = vmatpush3.bf16.msra.mxu0 %v1009_v24 }
  0x67   : > { %637 = vmatprep.subr.bf16.mxu0 %v882_v19 }
  0x6a   : > { %638 = vmatpush3.bf16.msra.mxu0 %v1017_v25 }
  0x6b   : > { %639 = vmatprep.subr.bf16.mxu0 %v882_v19 }
  0x6e   : > { %640 = vmatpush3.bf16.msra.mxu0 %v1025_v26 }
  0x6f   : > { %665 = vmatprep.subr.bf16.mxu0 %v882_v19 }
 0x124   : > { %v157_v29 = vpop.f32.mrb[0].mxu0 }
 0x125   : > { %v158_v30 = vadd.f32 %v157_v29, %v1053_v28  ;;  %v603_v31 = vpop.f32.mrb[1].mxu0 }
 0x126   : > { %v160_v32 = vpop.f32.mrb[2].mxu0 }
 0x127   : > { %771 = vtanh.f32 %v158_v30  ;;  %v604_v33 = vpop.f32.mrb[3].mxu0 }
 0x131   : > { %v772_v34 = vpop.eup %771 }
 0x132   : > { %v164_v35 = vpack.c.bf16 %v772_v34, %v772_v34 }
 0x134   : > { %622 = vmatmul.mubr.bf16.vlgmr.msra.gmra.mrb[0].mxu1 %v164_v35 }
 0x135   : > { %646 = vmatpush3.bf16.msra.mxu1 %v966_v18  ;;  %661 = vmatprep.mubr.msk.bf16.mxu1 %vm883_vm0, %v882_v19 }
 0x136   : > { %647 = vmatprep.subr.bf16.mxu1 %v882_v19 }
 0x139   : > { %648 = vmatpush3.bf16.msra.mxu1 %v972_v20 }
 0x13a   : > { %649 = vmatprep.subr.bf16.mxu1 %v882_v19 }
 0x13d   : > { %650 = vmatpush3.bf16.msra.mxu1 %v985_v21 }
 0x13e   : > { %651 = vmatprep.subr.bf16.mxu1 %v882_v19 }
 0x141   : > { %652 = vmatpush3.bf16.msra.mxu1 %v993_v22 }
 0x142   : > { %653 = vmatprep.subr.bf16.mxu1 %v882_v19 }
 0x145   : > { %654 = vmatpush3.bf16.msra.mxu1 %v1001_v23 }
 0x146   : > { %655 = vmatprep.subr.bf16.mxu1 %v882_v19 }
 0x149   : > { %656 = vmatpush3.bf16.msra.mxu1 %v1009_v24 }
 0x14a   : > { %657 = vmatprep.subr.bf16.mxu1 %v882_v19 }
 0x14d   : > { %658 = vmatpush3.bf16.msra.mxu1 %v1017_v25 }
 0x14e   : > { %659 = vmatprep.subr.bf16.mxu1 %v882_v19 }
 0x151   : > { %660 = vmatpush3.bf16.msra.mxu1 %v1025_v26 }
 0x152   : > { %685 = vmatprep.subr.bf16.mxu1 %v882_v19 }
 0x207   : > { %v202_v37 = vpop.f32.mrb[0].mxu1 }
 0x208   : > { %v203_v38 = vadd.f32 %v202_v37, %v166_v36  ;;  %v623_v39 = vpop.f32.mrb[1].mxu1  ;;  %v430_v37 = vrot.slane %v1053_v28, 7 }
 0x209   : > { %v205_v40 = vpop.f32.mrb[2].mxu1 }
 0x20a   : > { %773 = vtanh.f32 %v203_v38  ;;  %v624_v41 = vpop.f32.mrb[3].mxu1 }
 0x214   : > { %v774_v42 = vpop.eup %773 }
 0x215   : > { %v209_v43 = vpack.c.bf16 %v774_v42, %v774_v42 }
 0x217   : > { %642 = vmatmul.mubr.bf16.vlgmr.msra.gmra.mrb[4].mxu0 %v209_v43 }
 0x218   : > { %666 = vmatpush3.bf16.msra.mxu0 %v966_v18  ;;  %681 = vmatprep.mubr.msk.bf16.mxu0 %vm883_vm0, %v882_v19 }
 0x219   : > { %667 = vmatprep.subr.bf16.mxu0 %v882_v19 }
 0x21c   : > { %668 = vmatpush3.bf16.msra.mxu0 %v972_v20 }
 0x21d   : > { %669 = vmatprep.subr.bf16.mxu0 %v882_v19 }
 0x220   : > { %670 = vmatpush3.bf16.msra.mxu0 %v985_v21 }
 0x221   : > { %671 = vmatprep.subr.bf16.mxu0 %v882_v19 }
 0x224   : > { %672 = vmatpush3.bf16.msra.mxu0 %v993_v22 }
 0x225   : > { %673 = vmatprep.subr.bf16.mxu0 %v882_v19 }
 0x228   : > { %674 = vmatpush3.bf16.msra.mxu0 %v1001_v23 }
 0x229   : > { %675 = vmatprep.subr.bf16.mxu0 %v882_v19 }
 0x22c   : > { %676 = vmatpush3.bf16.msra.mxu0 %v1009_v24 }
 0x22d   : > { %677 = vmatprep.subr.bf16.mxu0 %v882_v19 }
 0x230   : > { %678 = vmatpush3.bf16.msra.mxu0 %v1017_v25 }
 0x231   : > { %679 = vmatprep.subr.bf16.mxu0 %v882_v19 }
 0x234   : > { %680 = vmatpush3.bf16.msra.mxu0 %v1025_v26 }
 0x235   : > { %705 = vmatprep.subr.bf16.mxu0 %v882_v19 }
 0x2ea   : > { %v246_v45 = vpop.f32.mrb[4].mxu0 }
 0x2eb   : > { %v247_v46 = vadd.f32 %v246_v45, %v210_v44  ;;  %v643_v47 = vpop.f32.mrb[5].mxu0 }
 0x2ec   : > { %v249_v48 = vpop.f32.mrb[6].mxu0 }
 0x2ed   : > { %775 = vtanh.f32 %v247_v46  ;;  %v644_v49 = vpop.f32.mrb[7].mxu0 }
 0x2f7   : > { %v776_v50 = vpop.eup %775 }
 0x2f8   : > { %v253_v51 = vpack.c.bf16 %v776_v50, %v776_v50 }
 0x2fa   : > { %662 = vmatmul.mubr.bf16.vlgmr.msra.gmra.mrb[4].mxu1 %v253_v51 }
 0x2fb   : > { %686 = vmatpush3.bf16.msra.mxu1 %v966_v18  ;;  %701 = vmatprep.mubr.msk.bf16.mxu1 %vm883_vm0, %v882_v19 }
 0x2fc   : > { %687 = vmatprep.subr.bf16.mxu1 %v882_v19 }
 0x2ff   : > { %688 = vmatpush3.bf16.msra.mxu1 %v972_v20 }
 0x300   : > { %689 = vmatprep.subr.bf16.mxu1 %v882_v19 }
 0x303   : > { %690 = vmatpush3.bf16.msra.mxu1 %v985_v21 }
 0x304   : > { %691 = vmatprep.subr.bf16.mxu1 %v882_v19 }
 0x307   : > { %692 = vmatpush3.bf16.msra.mxu1 %v993_v22 }
 0x308   : > { %693 = vmatprep.subr.bf16.mxu1 %v882_v19 }
 0x30b   : > { %694 = vmatpush3.bf16.msra.mxu1 %v1001_v23 }
 0x30c   : > { %695 = vmatprep.subr.bf16.mxu1 %v882_v19 }
 0x30f   : > { %696 = vmatpush3.bf16.msra.mxu1 %v1009_v24 }
 0x310   : > { %697 = vmatprep.subr.bf16.mxu1 %v882_v19 }
 0x313   : > { %698 = vmatpush3.bf16.msra.mxu1 %v1017_v25 }
 0x314   : > { %699 = vmatprep.subr.bf16.mxu1 %v882_v19 }
 0x317   : > { %700 = vmatpush3.bf16.msra.mxu1 %v1025_v26 }
 0x318   : > { %725 = vmatprep.subr.bf16.mxu1 %v882_v19 }
 0x3cd   : > { %v290_v53 = vpop.f32.mrb[4].mxu1 }
 0x3ce   : > { %v291_v54 = vadd.f32 %v290_v53, %v254_v52  ;;  %v663_v55 = vpop.f32.mrb[5].mxu1 }
 0x3cf   : > { %v293_v56 = vpop.f32.mrb[6].mxu1 }
 0x3d0   : > { %777 = vtanh.f32 %v291_v54  ;;  %v664_v57 = vpop.f32.mrb[7].mxu1 }
 0x3da   : > { %v778_v58 = vpop.eup %777 }
 0x3db   : > { %v297_v59 = vpack.c.bf16 %v778_v58, %v778_v58 }
 0x3dd   : > { %682 = vmatmul.mubr.bf16.vlgmr.msra.gmra.mrb[8].mxu0 %v297_v59 }
 0x3de   : > { %706 = vmatpush3.bf16.msra.mxu0 %v966_v18  ;;  %721 = vmatprep.mubr.msk.bf16.mxu0 %vm883_vm0, %v882_v19 }
 0x3df   : > { %707 = vmatprep.subr.bf16.mxu0 %v882_v19 }
 0x3e2   : > { %708 = vmatpush3.bf16.msra.mxu0 %v972_v20 }
 0x3e3   : > { %709 = vmatprep.subr.bf16.mxu0 %v882_v19 }
 0x3e6   : > { %710 = vmatpush3.bf16.msra.mxu0 %v985_v21 }
 0x3e7   : > { %711 = vmatprep.subr.bf16.mxu0 %v882_v19 }
 0x3ea   : > { %712 = vmatpush3.bf16.msra.mxu0 %v993_v22 }
 0x3eb   : > { %713 = vmatprep.subr.bf16.mxu0 %v882_v19 }
 0x3ee   : > { %714 = vmatpush3.bf16.msra.mxu0 %v1001_v23 }
 0x3ef   : > { %715 = vmatprep.subr.bf16.mxu0 %v882_v19 }
 0x3f2   : > { %716 = vmatpush3.bf16.msra.mxu0 %v1009_v24 }
 0x3f3   : > { %717 = vmatprep.subr.bf16.mxu0 %v882_v19 }
 0x3f6   : > { %718 = vmatpush3.bf16.msra.mxu0 %v1017_v25 }
 0x3f7   : > { %719 = vmatprep.subr.bf16.mxu0 %v882_v19 }
 0x3fa   : > { %720 = vmatpush3.bf16.msra.mxu0 %v1025_v26 }
 0x4b0   : > { %v334_v61 = vpop.f32.mrb[8].mxu0 }
 0x4b1   : > { %v335_v62 = vadd.f32 %v334_v61, %v298_v60  ;;  %v683_v63 = vpop.f32.mrb[9].mxu0 }
 0x4b2   : > { %v337_v0 = vpop.f32.mrb[10].mxu0 }
 0x4b3   : > { %779 = vtanh.f32 %v335_v62  ;;  %v684_v17 = vpop.f32.mrb[11].mxu0 }
 0x4bd   : > { %v780_v27 = vpop.eup %779 }
 0x4be   : > { %v341_v29 = vpack.c.bf16 %v780_v27, %v780_v27 }
 0x4c0   : > { %702 = vmatmul.mubr.bf16.vlgmr.msra.gmra.mrb[8].mxu1 %v341_v29 }
 0x4c1   : > { %726 = vmatpush3.bf16.msra.mxu1 %v966_v18  ;;  %741 = vmatprep.mubr.msk.bf16.mxu1 %vm883_vm0, %v882_v19  ;;  %v342_v18 = vrot.slane %v1053_v28, 5 }
 0x4c2   : > { %727 = vmatprep.subr.bf16.mxu1 %v882_v19 }
 0x4c5   : > { %728 = vmatpush3.bf16.msra.mxu1 %v972_v20 }
 0x4c6   : > { %729 = vmatprep.subr.bf16.mxu1 %v882_v19 }
 0x4c9   : > { %730 = vmatpush3.bf16.msra.mxu1 %v985_v21 }
 0x4ca   : > { %731 = vmatprep.subr.bf16.mxu1 %v882_v19 }
 0x4cd   : > { %732 = vmatpush3.bf16.msra.mxu1 %v993_v22 }
 0x4ce   : > { %733 = vmatprep.subr.bf16.mxu1 %v882_v19 }
 0x4d1   : > { %734 = vmatpush3.bf16.msra.mxu1 %v1001_v23 }
 0x4d2   : > { %735 = vmatprep.subr.bf16.mxu1 %v882_v19 }
 0x4d5   : > { %736 = vmatpush3.bf16.msra.mxu1 %v1009_v24  ;;  %v386_v24 = vrot.slane %v1053_v28, 6 }
 0x4d6   : > { %737 = vmatprep.subr.bf16.mxu1 %v882_v19 }
 0x4d9   : > { %738 = vmatpush3.bf16.msra.mxu1 %v1017_v25 }
 0x4da   : > { %739 = vmatprep.subr.bf16.mxu1 %v882_v19 }
 0x4dd   : > { %740 = vmatpush3.bf16.msra.mxu1 %v1025_v26 }
 0x593   : > { %v378_v20 = vpop.f32.mrb[8].mxu1 }
 0x594   : > { %v379_v21 = vadd.f32 %v378_v20, %v342_v18  ;;  %v703_v22 = vpop.f32.mrb[9].mxu1 }
 0x595   : > { %v381_v30 = vpop.f32.mrb[10].mxu1 }
 0x596   : > { %781 = vtanh.f32 %v379_v21  ;;  %v704_v23 = vpop.f32.mrb[11].mxu1 }
 0x5a0   : > { %v782_v31 = vpop.eup %781 }
 0x5a1   : > { %v385_v32 = vpack.c.bf16 %v782_v31, %v782_v31 }
 0x5a3   : > { %722 = vmatmul.mubr.bf16.vlgmr.msra.gmra.mrb[12].mxu0 %v385_v32 }
 0x676   : > { %v422_v33 = vpop.f32.mrb[12].mxu0 }
 0x677   : > { %v423_v34 = vadd.f32 %v422_v33, %v386_v24  ;;  %v723_v25 = vpop.f32.mrb[13].mxu0 }
 0x678   : > { %v425_v35 = vpop.f32.mrb[14].mxu0 }
 0x679   : > { %783 = vtanh.f32 %v423_v34  ;;  %v724_v19 = vpop.f32.mrb[15].mxu0 }
 0x683   : > { %v784_v26 = vpop.eup %783 }
 0x684   : > { %v429_v36 = vpack.c.bf16 %v784_v26, %v784_v26 }
 0x686   : > { %742 = vmatmul.mubr.bf16.vlgmr.msra.gmra.mrb[12].mxu1 %v429_v36 }
 0x759   : > { %v466_v38 = vpop.f32.mrb[12].mxu1 }
 0x75a   : > { %v467_v39 = vadd.f32 %v466_v38, %v430_v37  ;;  %v743_v40 = vpop.f32.mrb[13].mxu1 }
 0x75b   : > { %v469_v41 = vpop.f32.mrb[14].mxu1 }
 0x75c   : > { %785 = vtanh.f32 %v467_v39  ;;  %v744_v42 = vpop.f32.mrb[15].mxu1  ;;  %474 = vst [vmem:[#allocation8] sm:$0x1] (%p65_p2), %v467_v39 }
 0x761   :  { %67 = sbr.rel (!%p65_p2) target bundleno = 48 (0x30), region = 48 }
 0x766   : > { %v786_v43 = vpop.eup %785  }
 0x767   : > { %v1171_v17 = vmov %v786_v43  ;;  %473 = vst [vmem:[#allocation2] sm:$0x1] (%p65_p2), %v786_v43 }
 0x768   :  { %842 = shalt.err (!%p839_p7)
}
 0x769   :  { %s843_s16 = scalar_lea.hbm %s1170_s2, 16 }
 0x76a   :  { %p844_p8 = scmp.ne.s32.totalorder %s1170_s2, %s843_s16  ;;  %p847_p9 = scmp.lt.u32.totalorder %s843_s16, %s1170_s2 }
 0x76c   :  { %p849_p10 = pnand %p847_p9, %p844_p8 }
 0x76e   :  { %852 = shalt.err (!%p849_p10)
}
 0x76f   :  { %484 = dma.vmem_to_hbm [thread:$0]  %s482_s11, 16, %s1170_s2, [#allocation5]  }
 0x770   :  { %865 = dma.done.wait [#allocation5], 16  }
 0x771   :  { %866 = vsyncadd [#allocation5], 4294967280 }
 0x772   :  { %488 = vsyncpa [#allocation4], 1 }
 0x773   :  { %489 = vsyncpa [#allocation7], 1 }
 0x774   :  { %490 = vsyncpa [#allocation5], 1 }

</bundles_post_ra>
